<compile_context>
chip_gen: v6e
topology: v6e:2x2x1
jax: 0.10.0
libtpu: 0.0.40
codegen_flags: <defaults>
</compile_context>

<pallas_src>
import math

import jax
import jax.numpy as jnp
from jax import lax
from jax.experimental import pallas as pl
from jax.experimental.pallas import tpu as pltpu


# Standard contraction: x[., K] @ w[K, .]  (no trans-B -> no weight relayout)
_NT_DIMS = (((1,), (0,)), ((), ()))


def _round_up(x, m):
    return ((x + m - 1) // m) * m


def _vmem_capacity_bytes():
    """Physical per-core VMEM; conservative 64 MiB (v7x per-TC) if unqueryable."""
    try:
        info = pltpu.get_tpu_info()
        cap = getattr(info, "vmem_capacity_bytes", None)
        if cap:
            return int(cap)
    except Exception:
        pass
    return 64 * 1024 * 1024


def _resident_spec(block_shape, index_map):
    """BlockSpec for a constant-index block: single-buffer it if supported."""
    try:
        return pl.BlockSpec(block_shape, index_map, pipeline_mode=pl.Buffered(1))
    except Exception:  # older BlockSpec signature without pipeline_mode
        return pl.BlockSpec(block_shape, index_map)


# ---------------------------------------------------------------------------
# Kernels
# ---------------------------------------------------------------------------
def glu_fused_kernel(x_ref, w_ref, b_ref, o_ref):
    """h = x @ Wt + b (single fused MXU matmul); out = h[:, :D]*sigmoid(h[:, D:])."""
    d = o_ref.shape[-1]
    h = lax.dot_general(x_ref[...], w_ref[...], _NT_DIMS,
                        preferred_element_type=jnp.float32)
    h = h + b_ref[...]                     # [1, 2D] broadcast, stays f32
    a = h[:, :d]
    g = h[:, d:]
    o_ref[...] = (a * jax.nn.sigmoid(g)).astype(o_ref.dtype)


def glu_ntiled_kernel(x_ref, w_ref, b_ref, o_ref):
    """N-tiled fallback: weight block is [2, D_in, tn] (value/gate pair)."""
    x = x_ref[...]
    a = lax.dot_general(x, w_ref[0], _NT_DIMS,
                        preferred_element_type=jnp.float32) + b_ref[0]
    g = lax.dot_general(x, w_ref[1], _NT_DIMS,
                        preferred_element_type=jnp.float32) + b_ref[1]
    o_ref[...] = (a * jax.nn.sigmoid(g)).astype(o_ref.dtype)


# ---------------------------------------------------------------------------
# Wrapper
# ---------------------------------------------------------------------------
def glu_forward(x, weight, bias, *, tm=None, force_ntiled=False):
    """GLU forward.  x: [..., D]; weight: [2*D, D] (nn.Linear layout); bias: [2*D]."""
    *lead, D = x.shape
    M = math.prod(lead) if lead else 1
    x2d = x.reshape(M, D)

    itemsize = jnp.dtype(x.dtype).itemsize
    w_itemsize = jnp.dtype(weight.dtype).itemsize
    sub = 16 if itemsize == 2 else 8

    vmem_cap = _vmem_capacity_bytes()
    weight_bytes = 2 * D * D * w_itemsize
    resident_ok = (not force_ntiled) and (weight_bytes <= 0.5 * vmem_cap)

    # ---- row-tile size: target ~4 MiB per x tile, then fit the VMEM budget ----
    if tm is None:
        tm = (4 << 20) // max(D * itemsize, 1)
        tm = max(256, min(tm, 4096))
    budget = int(0.70 * vmem_cap)
    res_bytes = (2 * D * D + 2 * D) * w_itemsize if resident_ok else 0
    while tm > sub:
        need = (res_bytes
                + 2 * 2 * tm * D * itemsize      # double-buffered x + out tiles
                + 3 * tm * 2 * D * 4)            # f32 h / gate temporaries
        if need <= budget:
            break
        tm //= 2
    tm = max(sub, min(tm, _round_up(M, sub)))
    tm = _round_up(tm, sub)
    nm = pl.cdiv(M, tm)

    if resident_ok:
        # ---- main path: weight fully resident as a fused [D_in, 2*D] RHS ------
        w_t = weight.T                      # one-time transpose, amortized
        b2 = bias.reshape(1, 2 * D)

        need = (res_bytes + 2 * 2 * tm * D * itemsize + 3 * tm * 2 * D * 4)
        vmem_limit = int(min(max(int(1.3 * need), 32 << 20), int(0.9 * vmem_cap)))

        cost = pl.CostEstimate(
            flops=4 * M * D * D,
            transcendentals=M * D,
            bytes_accessed=(2 * M * D) * itemsize + (2 * D * D + 2 * D) * w_itemsize,
        )

        out = pl.pallas_call(
            glu_fused_kernel,
            out_shape=jax.ShapeDtypeStruct((M, D), x.dtype),
            grid_spec=pltpu.PrefetchScalarGridSpec(
                num_scalar_prefetch=0,
                grid=(nm,),
                in_specs=[
                    pl.BlockSpec((tm, D), lambda i: (i, 0)),          # x rows
                    _resident_spec((D, 2 * D), lambda i: (0, 0)),     # weight
                    _resident_spec((1, 2 * D), lambda i: (0, 0)),     # bias
                ],
                out_specs=pl.BlockSpec((tm, D), lambda i: (i, 0)),
            ),
            compiler_params=pltpu.CompilerParams(
                # Row tiles are independent -> shards across TCs on v7x.
                dimension_semantics=("parallel",),
                vmem_limit_bytes=vmem_limit,
            ),
            cost_estimate=cost,
        )(x2d, w_t, b2)
    else:
        # ---- fallback: tile output features; weight pipelined, VMEM bounded ---
        w3 = weight.reshape(2, D, D).transpose(0, 2, 1)   # [2, D_in, D_out]
        b3 = bias.reshape(2, 1, D)

        tn = min(D, 512) if D % 128 == 0 else D
        nn = pl.cdiv(D, tn)

        need = (2 * 2 * 2 * D * tn * w_itemsize           # double-buffered weight
                + 2 * 2 * tm * D * itemsize               # x tiles
                + 2 * tm * tn * itemsize                  # out tiles
                + 3 * tm * 2 * tn * 4)                    # f32 temporaries
        vmem_limit = int(min(max(int(1.3 * need), 32 << 20), int(0.9 * vmem_cap)))

        cost = pl.CostEstimate(
            flops=4 * M * D * D,
            transcendentals=M * D,
            bytes_accessed=((nn + 1) * M * D) * itemsize
            + (2 * D * D + 2 * D) * w_itemsize,
        )

        out = pl.pallas_call(
            glu_ntiled_kernel,
            out_shape=jax.ShapeDtypeStruct((M, D), x.dtype),
            grid_spec=pltpu.PrefetchScalarGridSpec(
                num_scalar_prefetch=0,
                # N outer / M inner: the large weight block stays put across all
                # row tiles; x is re-streamed once per N tile (compute-bound at
                # the D where this path triggers).
                grid=(nn, nm),
                in_specs=[
                    pl.BlockSpec((tm, D), lambda j, i: (i, 0)),
                    pl.BlockSpec((2, D, tn), lambda j, i: (0, 0, j)),
                    pl.BlockSpec((2, 1, tn), lambda j, i: (0, 0, j)),
                ],
                out_specs=pl.BlockSpec((tm, tn), lambda j, i: (i, j)),
            ),
            compiler_params=pltpu.CompilerParams(
                dimension_semantics=("parallel", "parallel"),
                vmem_limit_bytes=vmem_limit,
            ),
            cost_estimate=cost,
        )(x2d, w3, b3)

    return out.reshape(*lead, D)


if __name__ == "__main__":
    # Small shapes consistent with the module: batch=2, seq=8, input_dim=32.
    batch, seq, input_dim = 2, 8, 32

    key = jax.random.PRNGKey(0)
    kx, kw, kb = jax.random.split(key, 3)

    x = jax.random.normal(kx, (batch, seq, input_dim), dtype=jnp.float32)

    # Deterministic nn.Linear-style init: U(-1/sqrt(D), 1/sqrt(D)).
    bound = 1.0 / (input_dim ** 0.5)
    weight = jax.random.uniform(
        kw, (2 * input_dim, input_dim), minval=-bound, maxval=bound,
        dtype=jnp.float32)
    bias = jax.random.uniform(
        kb, (2 * input_dim,), minval=-bound, maxval=bound, dtype=jnp.float32)

    # Pure-JAX reference.
    h = x @ weight.T + bias
    a_ref, g_ref = jnp.split(h, 2, axis=-1)
    ref = a_ref * jax.nn.sigmoid(g_ref)

    # Main (resident fused weight) path.
    out = jax.block_until_ready(glu_forward(x, weight, bias))
    assert out.shape == ref.shape
    assert jnp.allclose(out, ref, atol=1e-5, rtol=1e-5)

    # Also exercise the N-tiled (weight-too-big-for-VMEM) fallback path.
    out_nt = jax.block_until_ready(glu_forward(x, weight, bias, force_ntiled=True))
    assert jnp.allclose(out_nt, ref, atol=1e-5, rtol=1e-5)

    print("KERNEL_OK")
</pallas_src>

<mosaic_0001>
module attributes {stable_mosaic.version = 11 : i64} {
  func.func @glu_fused_kernel(%arg0: i32, %arg1: memref<16x32xf32, #tpu.memory_space<vmem>>, %arg2: memref<32x64xf32, #tpu.memory_space<vmem>>, %arg3: memref<1x64xf32, #tpu.memory_space<vmem>>, %arg4: memref<16x32xf32, #tpu.memory_space<vmem>>) attributes {dimension_semantics = [#tpu.dimension_semantics<parallel>], iteration_bounds = array<i64: 1>, scalar_prefetch = 0 : i64, scratch_operands = 0 : i64, tpu.core_type = #tpu.core_type<tc>, window_params = [{transform_indices = @transform_0, window_bounds = array<i64: 16, 32>}, {pipeline_mode = #tpu.pipeline_mode<synchronous>, transform_indices = @transform_1, window_bounds = array<i64: 32, 64>}, {pipeline_mode = #tpu.pipeline_mode<synchronous>, transform_indices = @transform_2, window_bounds = array<i64: 1, 64>}, {transform_indices = @transform_3, window_bounds = array<i64: 16, 32>}]} {
    %c0 = arith.constant 0 : index
    %c0_0 = arith.constant 0 : index
    %0 = vector.load %arg1[%c0, %c0_0] : memref<16x32xf32, #tpu.memory_space<vmem>>, vector<16x32xf32>
    %c0_1 = arith.constant 0 : index
    %c0_2 = arith.constant 0 : index
    %1 = vector.load %arg2[%c0_1, %c0_2] : memref<32x64xf32, #tpu.memory_space<vmem>>, vector<32x64xf32>
    %cst = arith.constant dense<0.000000e+00> : vector<16x64xf32>
    %2 = tpu.matmul %0, %1, %cst {dimension_numbers = #tpu.dot_dimension_numbers<[1], [0], [0], [1], [0, 0, 1, 1], [], []>} : vector<16x32xf32>, vector<32x64xf32>, vector<16x64xf32> -> vector<16x64xf32>
    %c0_3 = arith.constant 0 : index
    %c0_4 = arith.constant 0 : index
    %3 = vector.load %arg3[%c0_3, %c0_4] : memref<1x64xf32, #tpu.memory_space<vmem>>, vector<1x64xf32>
    %4 = vector.broadcast %3 : vector<1x64xf32> to vector<16x64xf32>
    %5 = arith.addf %2, %4 : vector<16x64xf32>
    %6 = vector.extract_strided_slice %5 {offsets = [0, 0], sizes = [16, 32], strides = [1, 1]} : vector<16x64xf32> to vector<16x32xf32>
    %7 = vector.extract_strided_slice %5 {offsets = [0, 32], sizes = [16, 32], strides = [1, 1]} : vector<16x64xf32> to vector<16x32xf32>
    %8 = arith.negf %7 : vector<16x32xf32>
    %9 = math.exp %8 : vector<16x32xf32>
    %cst_5 = arith.constant 1.000000e+00 : f32
    %10 = vector.broadcast %cst_5 : f32 to vector<16x32xf32>
    %11 = arith.addf %10, %9 : vector<16x32xf32>
    %12 = arith.divf %10, %11 : vector<16x32xf32>
    %13 = arith.mulf %6, %12 : vector<16x32xf32>
    %c0_6 = arith.constant 0 : index
    %c0_7 = arith.constant 0 : index
    %14 = vector.load %arg4[%c0_6, %c0_7] : memref<16x32xf32, #tpu.memory_space<vmem>>, vector<16x32xf32>
    tpu.vector_store %arg4[%c0_6, %c0_7], %13 {strides = array<i32>} : memref<16x32xf32, #tpu.memory_space<vmem>>, vector<16x32xf32>,
    return
  }
  func.func @transform_0(%arg0: i32) -> (i32, i32) {
    %c0_i32 = arith.constant 0 : i32
    %c0_i32_0 = arith.constant 0 : i32
    return %arg0, %c0_i32 : i32, i32
  }
  func.func @transform_1(%arg0: i32) -> (i32, i32) {
    %c0_i32 = arith.constant 0 : i32
    %c0_i32_0 = arith.constant 0 : i32
    %c0_i32_1 = arith.constant 0 : i32
    return %c0_i32, %c0_i32_0 : i32, i32
  }
  func.func @transform_2(%arg0: i32) -> (i32, i32) {
    %c0_i32 = arith.constant 0 : i32
    %c0_i32_0 = arith.constant 0 : i32
    %c0_i32_1 = arith.constant 0 : i32
    return %c0_i32, %c0_i32_0 : i32, i32
  }
  func.func @transform_3(%arg0: i32) -> (i32, i32) {
    %c0_i32 = arith.constant 0 : i32
    %c0_i32_0 = arith.constant 0 : i32
    return %arg0, %c0_i32 : i32, i32
  }
}

</mosaic_0001>

<bundles_post_ra>
// kernel: tpu_custom_call.1
= control target key start
LH: loop header
LB: loop body
LE: loop exit
PB: predicated region body
PF: predicated region fallthrough
CT: control target
= control target key end

     0   :  { %8 = vsyncpa [#allocation3], 0  ;;  %s333_s0 = inlined_call_operand.hbm [shape: f32[16,32], index: 0, kind: input, shape index: {}]   ;;  %s334_s1 = inlined_call_operand.hbm [shape: f32[32,64], index: 1, kind: input, shape index: {}]   ;;  %s335_s2 = inlined_call_operand.vmem [shape: f32[1,64], index: 2, kind: input, shape index: {}]   ;;  %s336_s3 = inlined_call_operand.hbm [shape: f32[16,32], index: 3, kind: output, shape index: {}]  }
   0x1   :  { %9 = vsyncpa [#allocation6], 0 }
   0x2   :  { %10 = vsyncpa [#allocation4], 0  ;;  %s282_s12 = smov [#allocation2]  }
   0x3   :  { %s16_s13 = sshll.u32 %s282_s12, 4  ;;  %s17_s13 = int_to_ptr.vmem [resolvable:$true] %s16_s13 }
   0x4   :  { %s224_s14 = scalar_lea.vmem %s17_s13, 256  ;;  %p229_p1 = scmp.lt.s32.totalorder %s17_s13, %s17_s13 }
   0x5   :  { %p225_p0 = scmp.ne.s32.totalorder %s17_s13, %s224_s14  ;;  %p230_p2 = scmp.lt.s32.totalorder %s224_s14, %s224_s14 }
   0x7   :  { %p231_p3 = por %p230_p2, %p229_p1 }
   0x9   :  { %p232_p4 = pnand %p231_p3, %p225_p0 }
   0xb   :  { %235 = shalt.err (!%p232_p4)
}
   0xc   :  { %s283_s15 = smov 128   ;;  %s284_s16 = smov 8  }
   0xd   :  { %22 = dma.hbm_to_vmem [thread:$0]  %s333_s0, 256, %s17_s13, [#allocation3], %s283_s15, %s283_s15, %s284_s16  }
   0xe   :  { %s285_s19 = smov [#allocation5]  }
   0xf   :  { %s28_s20 = sshll.u32 %s285_s19, 4  ;;  %s29_s20 = int_to_ptr.vmem [resolvable:$true] %s28_s20 }
  0x10   :  { %s244_s21 = scalar_lea.vmem %s29_s20, 512  ;;  %p249_p6 = scmp.lt.s32.totalorder %s29_s20, %s29_s20 }
  0x11   :  { %p245_p5 = scmp.ne.s32.totalorder %s29_s20, %s244_s21  ;;  %p250_p7 = scmp.lt.s32.totalorder %s244_s21, %s244_s21 }
  0x13   :  { %p251_p8 = por %p250_p7, %p249_p6 }
  0x15   :  { %p252_p9 = pnand %p251_p8, %p245_p5 }
  0x17   :  { %255 = shalt.err (!%p252_p9)
}
  0x18   :  { %34 = dma.hbm_to_vmem [thread:$0]  %s334_s1, 512, %s29_s20, [#allocation6], %s283_s15, %s283_s15, %s284_s16  }
  0x19   :  { %276 = dma.done.wait [#allocation3], 256  }
  0x1a   :  { %277 = vsyncadd [#allocation3], 4294967040 }
  0x1b   :  { %278 = dma.done.wait [#allocation6], 512  }
  0x1c   :  { %279 = vsyncadd [#allocation6], 4294966784  ;;  %vm56_vm0 = vcmask 261120   ;;  %v48_v0 = vld [vmem:[#allocation5 + $0x18] sm:$0xff]  ;;  %v47_v1 = vld [vmem:[#allocation5 + $0x10] sm:$0xff]  ;;  %s286_s24 = smov 96  }
  0x1d   :  { %191 = vmatprep.subr.mxu0 %v48_v0  ;;  %v43_v2 = vld [vmem:[#allocation2] sm:$0xff]  ;;  %v46_v3 = vld [vmem:[#allocation5 + $0x8] sm:$0xff]  ;;  %v45_v4 = vld [vmem:[#allocation5] sm:$0xff] }
  0x1e   :  { %192 = vmatpush3.msra.mxu0 %v48_v0  ;;  %199 = vmatprep.mubr.msk.f32.mxu0 %vm56_vm0, %v43_v2  ;;  %v44_v5 = vld [vmem:[#allocation2 + $0x8] sm:$0xff]  ;;  %v180_v6 = vld [vmem:[%s335_s2] ss:$0 sm:$0xff]  ;;  %s287_s2 = smov [#allocation7]  }
  0x1f   :  { %193 = vmatprep.subr.mxu0 %v47_v1  ;;  %s167_s25 = sshll.u32 %s287_s2, 4  ;;  %s168_s25 = int_to_ptr.vmem [resolvable:$true] %s167_s25 }
  0x20   :  { %194 = vmatpush3.msra.mxu0 %v47_v1  ;;  %s256_s26 = scalar_lea.vmem %s168_s25, 256  ;;  %p261_p11 = scmp.lt.s32.totalorder %s168_s25, %s168_s25 }
  0x21   :  { %195 = vmatprep.subr.mxu0 %v46_v3  ;;  %p257_p10 = scmp.ne.s32.totalorder %s168_s25, %s256_s26  ;;  %p262_p12 = scmp.lt.s32.totalorder %s256_s26, %s256_s26 }
  0x22   :  { %196 = vmatpush3.msra.mxu0 %v46_v3 }
  0x23   :  { %197 = vmatprep.subr.mxu0 %v45_v4  ;;  %p263_p13 = por %p262_p12, %p261_p11 }
  0x24   :  { %198 = vmatpush3.msra.mxu0 %v45_v4 }
  0x25   :  { %200 = vmatmul.mubr.msk.f32.vlgmr.msra.gmra.mxu0 %vm56_vm0, %v44_v5  ;;  %p264_p0 = pnand %p263_p13, %p257_p10 }
  0xe5   :  { %v201_v7 = vpop.f32.mrf.mxu0 }
  0xe6   :  { %v135_v8 = vadd.f32 %v201_v7, %v180_v6 }
  0xe7   :  { %v129_v9 = vpop.f32.mrf.mxu0 }
  0xe8   :  { %v184_v10 = vmul.f32 -1.442695, %v135_v8  ;;  %v130_v11 = vadd.f32 %v180_v6, %v129_v9 }
  0xea   :  { %v183_v12 = vmul.f32 -1.442695, %v130_v11  ;;  %208 = vpow2.f32 %v184_v10 }
  0xec   :  { %210 = vpow2.f32 %v183_v12 }
  0xf7   :  { %v209_v13 = vpop.eup %208 }
  0xf8   :  { %v145_v16 = vadd.f32 1.0, %v209_v13 }
  0xf9   :  { %v211_v14 = vpop.eup %210 }
  0xfa   :  { %v144_v15 = vadd.f32 1.0, %v211_v14 }
  0xfc   :  { %212 = vrcp.f32 %v144_v15 }
  0xfd   :  { %214 = vrcp.f32 %v145_v16 }
 0x109   :  { %v213_v17 = vpop.eup %212 }
 0x10a   :  { %152 = vrot.lane.b32.xlu0 %v213_v17, %s286_s24  ;;  %v215_v18 = vpop.eup %214 }
 0x10e   :  { %154 = vrot.lane.b32.xlu0 %v215_v18, %s286_s24 }
 0x17c   :  { %v153_v19 = vpop.permute.xlu0 %152 }
 0x17d   :  { %v158_v20 = vmul.f32 %v153_v19, %v130_v11 }
 0x17f   :  { %160 = vst.msk [vmem:[#allocation7] sm:$0xff] %vm56_vm0, %v158_v20 }
 0x180   :  { %v155_v21 = vpop.permute.xlu0 %154 }
 0x181   :  { %v159_v22 = vmul.f32 %v155_v21, %v135_v8 }
 0x183   :  { %161 = vst.msk [vmem:[#allocation7 + $0x8] sm:$0xff] %vm56_vm0, %v159_v22 }
 0x184   :  { %267 = shalt.err (!%p264_p0)
}
 0x185   :  { %173 = dma.vmem_to_hbm [thread:$0]  %s168_s25, 256, %s336_s3, [#allocation4], %s283_s15, %s283_s15, %s284_s16  }
 0x186   :  { %280 = dma.done.wait [#allocation4], 256  }
 0x187   :  { %281 = vsyncadd [#allocation4], 4294967040 }
 0x188   :  { %177 = vsyncpa [#allocation3], 1 }
 0x189   :  { %178 = vsyncpa [#allocation6], 1 }
 0x18a   :  { %179 = vsyncpa [#allocation4], 1 }

</bundles_post_ra>
